<compile_context>
chip_gen: v6e
topology: v6e:2x2x1
jax: 0.10.0
libtpu: 0.0.40
codegen_flags: <defaults>
</compile_context>

<pallas_src>
import math

import jax
import jax.numpy as jnp
from jax import lax
from jax.experimental import pallas as pl
from jax.experimental.pallas import tpu as pltpu

_LANE = 128


def _cdiv(a: int, b: int) -> int:
    return (a + b - 1) // b


def _round_up(v: int, m: int) -> int:
    return _cdiv(v, m) * m


def _sublane_multiple(dtype) -> int:
    # Minimum second-to-last tile dim: 8 for f32, 16 for bf16, 32 for int8/fp8.
    return max(8, 32 // jnp.dtype(dtype).itemsize)


def _tpu_vmem_budget_bytes() -> int:
    """Per-core VMEM budget with headroom.

    v7x (64 MiB physical per TC) -> ~48 MiB; v5e/v6e (128 MiB) -> 96 MiB.
    Conservative (v7x-sized) fallback if the hardware query is unavailable.
    """
    try:
        cap = int(pltpu.get_tpu_info().vmem_capacity_bytes)
    except Exception:
        cap = 64 * 1024 * 1024
    return min(cap * 3 // 4, 96 * 1024 * 1024)


def _vmem_usage(tm, tn, tk, x_item, w_item, out_item, with_acc) -> int:
    x_t = 2 * tm * tk * x_item        # double-buffered x tile
    w_t = 2 * tn * tk * w_item        # double-buffered weight tile
    o_t = 2 * tm * tn * out_item      # double-buffered output tile
    b_t = 2 * 8 * tn * 4              # bias tile (sublane-padded)
    acc = tm * tn * 4 if with_acc else 0
    return x_t + w_t + o_t + b_t + acc


# ----------------------------------------------------------------------------
# Kernels
# ----------------------------------------------------------------------------
def _linear_single_k_kernel(x_ref, w_ref, b_ref, o_ref):
    """Single K step (covers the weight-resident path): no scratch, no phases.

    x_ref: (tm, tk)  w_ref: (tn, tk)  b_ref: (1, tn)  o_ref: (tm, tn)
    Contracts dim 1 of both operands (x @ W^T); W^T is never materialized and
    the MXU consumes the (tn, tk) rhs tile natively.
    """
    # TODO(synk): confirm in the Mosaic dump that no vxpose is emitted for the
    # rhs tile; if it is, pre-transpose W to (K, M) once in the wrapper.
    acc = lax.dot_general(
        x_ref[...], w_ref[...],
        dimension_numbers=(((1,), (1,)), ((), ())),
        preferred_element_type=jnp.float32,
    )
    o_ref[...] = (acc + b_ref[...]).astype(o_ref.dtype)


def _linear_acc_kernel(x_ref, w_ref, b_ref, o_ref, acc_ref):
    """General tiled path with K-innermost reduction and f32 accumulator."""
    kk = pl.program_id(2)

    @pl.when(kk == 0)
    def _():
        acc_ref[...] = jnp.zeros_like(acc_ref)

    acc_ref[...] += lax.dot_general(
        x_ref[...], w_ref[...],
        dimension_numbers=(((1,), (1,)), ((), ())),
        preferred_element_type=jnp.float32,
    )

    @pl.when(kk == pl.num_programs(2) - 1)
    def _():
        o_ref[...] = (acc_ref[...] + b_ref[...]).astype(o_ref.dtype)


# ----------------------------------------------------------------------------
# Wrapper
# ----------------------------------------------------------------------------
def min_linear(x: jax.Array, weight: jax.Array, bias=None,
               *, tm: int = 512, tn: int = 512, tk: int = 1024,
               allow_resident: bool = True) -> jax.Array:
    """y = x @ weight.T + bias   (torch.nn.functional.linear semantics).

    x:      (N, in_channels)
    weight: (out_channels, in_channels)  -- PyTorch layout, not pre-transposed
    bias:   (out_channels,) or None
    """
    n, k = x.shape
    m, k2 = weight.shape
    assert k == k2, "in_channels mismatch"
    if bias is not None:
        assert bias.shape == (m,)

    out_dtype = jnp.result_type(x.dtype, weight.dtype)
    x_item = jnp.dtype(x.dtype).itemsize
    w_item = jnp.dtype(weight.dtype).itemsize
    out_item = jnp.dtype(out_dtype).itemsize

    sub = _sublane_multiple(x.dtype)
    n_al = _round_up(max(n, sub), sub)
    m_lane = _round_up(max(m, _LANE), _LANE)
    k_lane = _round_up(max(k, _LANE), _LANE)

    budget = _tpu_vmem_budget_bytes()

    tm_req = _round_up(max(tm, sub), sub)
    tn_req = max(tn, _LANE)
    tk_req = max(tk, _LANE)

    # Weight-resident fast path: W DMA'd once and kept in VMEM, x streamed once.
    # Gate (single-copy W <= budget/3) -> ~16 MiB on v7x, ~32 MiB on v5e/v6e.
    resident = allow_resident and (m_lane * k_lane * w_item <= budget // 3)

    def choose(resident_, tn_r, tk_r):
        tn_ = m_lane if resident_ else min(tn_r, m_lane)
        tk_ = k_lane if resident_ else min(tk_r, k_lane)
        gc_ = _cdiv(m_lane, tn_)
        tn_ = _round_up(_cdiv(m_lane, gc_), _LANE)   # tighten column padding
        gk_ = _cdiv(k_lane, tk_)
        tk_ = _round_up(_cdiv(k_lane, gk_), _LANE)   # tighten K padding
        single_k_ = gk_ == 1
        tm_ = min(tm_req, n_al)
        while (_vmem_usage(tm_, tn_, tk_, x_item, w_item, out_item, not single_k_)
               > budget and tm_ > sub):
            tm_ = max(sub, _round_up(tm_ // 2, sub))
        fits_ = _vmem_usage(tm_, tn_, tk_, x_item, w_item, out_item,
                            not single_k_) <= budget
        return fits_, tm_, tn_, tk_, gc_, gk_, single_k_

    while True:
        fits, tm_s, tn_s, tk_s, gc, gk, single_k = choose(resident, tn_req, tk_req)
        if fits:
            break
        if resident:
            resident = False
            continue
        if tk_req > _LANE and tk_req >= tn_req:
            tk_req = max(_LANE, tk_req // 2)
        elif tn_req > _LANE:
            tn_req = max(_LANE, tn_req // 2)
        else:
            break  # minimal tiles already; proceed and let the compiler decide
    tm, tn, tk = tm_s, tn_s, tk_s

    # Ragged-N tightening; on large single-block problems split rows so both
    # v7x TensorCores get work (harmless no-op elsewhere / at small N).
    gr = _cdiv(n_al, tm)
    if gr * gc == 1 and n_al >= 512:
        gr = 2
    tm = _round_up(_cdiv(n_al, gr), sub)
    n_p, m_p, k_p = tm * gr, tn * gc, tk * gk

    # Pad only when actually required (reusable weights can be pre-padded once
    # by the caller to avoid this HBM pass on every call).
    x_p = x if (n_p == n and k_p == k) else jnp.pad(x, ((0, n_p - n), (0, k_p - k)))
    w_p = weight if (m_p == m and k_p == k) else jnp.pad(
        weight, ((0, m_p - m), (0, k_p - k)))
    if bias is None:
        b_p = jnp.zeros((1, m_p), out_dtype)
    else:
        b_vec = bias if m_p == m else jnp.pad(bias, (0, m_p - m))
        b_p = b_vec.reshape(1, m_p)

    cost = pl.CostEstimate(
        flops=2 * n_p * m_p * k_p,
        transcendentals=0,
        bytes_accessed=(n_p * k_p * x_item + m_p * k_p * w_item
                        + n_p * m_p * out_item + m_p * out_item),
    )
    cparams = pltpu.CompilerParams(
        dimension_semantics=(("parallel", "parallel") if single_k
                             else ("parallel", "parallel", "arbitrary")),
        vmem_limit_bytes=int(budget),
    )

    if single_k:
        out = pl.pallas_call(
            _linear_single_k_kernel,
            out_shape=jax.ShapeDtypeStruct((n_p, m_p), out_dtype),
            grid_spec=pltpu.PrefetchScalarGridSpec(
                num_scalar_prefetch=0,
                grid=(gr, gc),
                in_specs=[
                    pl.BlockSpec((tm, tk), lambda i, j: (i, 0)),   # x tile
                    pl.BlockSpec((tn, tk), lambda i, j: (j, 0)),   # weight (out, in)
                    pl.BlockSpec((1, tn), lambda i, j: (0, j)),    # bias
                ],
                out_specs=pl.BlockSpec((tm, tn), lambda i, j: (i, j)),
            ),
            compiler_params=cparams,
            cost_estimate=cost,
        )(x_p, w_p, b_p)
    else:
        out = pl.pallas_call(
            _linear_acc_kernel,
            out_shape=jax.ShapeDtypeStruct((n_p, m_p), out_dtype),
            grid_spec=pltpu.PrefetchScalarGridSpec(
                num_scalar_prefetch=0,
                grid=(gr, gc, gk),
                in_specs=[
                    pl.BlockSpec((tm, tk), lambda i, j, kk: (i, kk)),  # x tile
                    pl.BlockSpec((tn, tk), lambda i, j, kk: (j, kk)),  # weight tile
                    pl.BlockSpec((1, tn), lambda i, j, kk: (0, j)),    # bias tile
                ],
                out_specs=pl.BlockSpec((tm, tn), lambda i, j, kk: (i, j)),
                scratch_shapes=[pltpu.VMEM((tm, tn), jnp.float32)],
            ),
            compiler_params=cparams,
            cost_estimate=cost,
        )(x_p, w_p, b_p)

    if n_p != n or m_p != m:
        out = out[:n, :m]
    return out


def init_params(key, in_channels: int, out_channels: int):
    """Match the module defaults (weight_initializer=None, bias_initializer=None):
    - weight: kaiming_uniform, fan=in_channels, a=sqrt(5)
    - bias:   U(-1/sqrt(in), 1/sqrt(in))
    """
    kw, kb = jax.random.split(key)
    a = math.sqrt(5.0)
    w_bound = math.sqrt(6.0 / ((1.0 + a * a) * in_channels))
    weight = jax.random.uniform(
        kw, (out_channels, in_channels), jnp.float32, -w_bound, w_bound)
    b_bound = 1.0 / math.sqrt(in_channels)
    bias = jax.random.uniform(kb, (out_channels,), jnp.float32, -b_bound, b_bound)
    return weight, bias


if __name__ == "__main__":
    key = jax.random.PRNGKey(0)
    k_x, k_p, k_x2, k_p2 = jax.random.split(key, 4)

    # --- small shapes consistent with the module (N nodes x in_channels) ----
    # Exercises the weight-resident / single-K fast path.
    N, IN_C, OUT_C = 8, 32, 16
    x = jax.random.normal(k_x, (N, IN_C), jnp.float32)
    weight, bias = init_params(k_p, IN_C, OUT_C)

    y = jax.block_until_ready(min_linear(x, weight, bias))
    y_ref = x @ weight.T + bias
    assert y.shape == (N, OUT_C)
    assert jnp.allclose(y, y_ref, atol=1e-5, rtol=1e-5), "mismatch (resident path)"

    # --- also exercise the multi-K accumulator path --------------------------
    N2, IN2, OUT2 = 64, 384, 192
    x2 = jax.random.normal(k_x2, (N2, IN2), jnp.float32)
    w2, b2 = init_params(k_p2, IN2, OUT2)
    y2 = jax.block_until_ready(
        min_linear(x2, w2, b2, tn=128, tk=128, allow_resident=False))
    y2_ref = x2 @ w2.T + b2
    assert y2.shape == (N2, OUT2)
    assert jnp.allclose(y2, y2_ref, atol=5e-3, rtol=5e-3), "mismatch (tiled path)"

    print("KERNEL_OK")
</pallas_src>

<mosaic_0001>
module attributes {stable_mosaic.version = 11 : i64} {
  func.func @_linear_single_k_kernel(%arg0: i32, %arg1: i32, %arg2: memref<8x128xf32, #tpu.memory_space<vmem>>, %arg3: memref<128x128xf32, #tpu.memory_space<vmem>>, %arg4: memref<1x128xf32, #tpu.memory_space<vmem>>, %arg5: memref<8x128xf32, #tpu.memory_space<vmem>>) attributes {dimension_semantics = [#tpu.dimension_semantics<parallel>, #tpu.dimension_semantics<parallel>], iteration_bounds = array<i64: 1, 1>, scalar_prefetch = 0 : i64, scratch_operands = 0 : i64, tpu.core_type = #tpu.core_type<tc>, window_params = [{transform_indices = @transform_0, window_bounds = array<i64: 8, 128>}, {transform_indices = @transform_1, window_bounds = array<i64: 128, 128>}, {transform_indices = @transform_2, window_bounds = array<i64: 1, 128>}, {transform_indices = @transform_3, window_bounds = array<i64: 8, 128>}]} {
    %c0 = arith.constant 0 : index
    %c0_0 = arith.constant 0 : index
    %0 = vector.load %arg2[%c0, %c0_0] : memref<8x128xf32, #tpu.memory_space<vmem>>, vector<8x128xf32>
    %c0_1 = arith.constant 0 : index
    %c0_2 = arith.constant 0 : index
    %1 = vector.load %arg3[%c0_1, %c0_2] : memref<128x128xf32, #tpu.memory_space<vmem>>, vector<128x128xf32>
    %cst = arith.constant dense<0.000000e+00> : vector<8x128xf32>
    %2 = tpu.matmul %0, %1, %cst {dimension_numbers = #tpu.dot_dimension_numbers<[1], [1], [0], [0], [0, 0, 1, 0], [], []>} : vector<8x128xf32>, vector<128x128xf32>, vector<8x128xf32> -> vector<8x128xf32>
    %c0_3 = arith.constant 0 : index
    %c0_4 = arith.constant 0 : index
    %3 = vector.load %arg4[%c0_3, %c0_4] : memref<1x128xf32, #tpu.memory_space<vmem>>, vector<1x128xf32>
    %4 = vector.broadcast %3 : vector<1x128xf32> to vector<8x128xf32>
    %5 = arith.addf %2, %4 : vector<8x128xf32>
    %c0_5 = arith.constant 0 : index
    %c0_6 = arith.constant 0 : index
    %6 = vector.load %arg5[%c0_5, %c0_6] : memref<8x128xf32, #tpu.memory_space<vmem>>, vector<8x128xf32>
    tpu.vector_store %arg5[%c0_5, %c0_6], %5 {strides = array<i32>} : memref<8x128xf32, #tpu.memory_space<vmem>>, vector<8x128xf32>,
    return
  }
  func.func @transform_0(%arg0: i32, %arg1: i32) -> (i32, i32) {
    %c0_i32 = arith.constant 0 : i32
    %c0_i32_0 = arith.constant 0 : i32
    return %arg0, %c0_i32 : i32, i32
  }
  func.func @transform_1(%arg0: i32, %arg1: i32) -> (i32, i32) {
    %c0_i32 = arith.constant 0 : i32
    %c0_i32_0 = arith.constant 0 : i32
    return %arg1, %c0_i32 : i32, i32
  }
  func.func @transform_2(%arg0: i32, %arg1: i32) -> (i32, i32) {
    %c0_i32 = arith.constant 0 : i32
    %c0_i32_0 = arith.constant 0 : i32
    return %c0_i32, %arg1 : i32, i32
  }
  func.func @transform_3(%arg0: i32, %arg1: i32) -> (i32, i32) {
    %c0_i32 = arith.constant 0 : i32
    return %arg0, %arg1 : i32, i32
  }
}

</mosaic_0001>

<bundles_post_ra>
// kernel: tpu_custom_call.1
= control target key start
LH: loop header
LB: loop body
LE: loop exit
PB: predicated region body
PF: predicated region fallthrough
CT: control target
= control target key end

     0   :  { %8 = vsyncpa [#allocation3], 0  ;;  %s317_s0 = inlined_call_operand.hbm [shape: f32[8,128], index: 0, kind: input, shape index: {}]   ;;  %s318_s1 = inlined_call_operand.hbm [shape: f32[128,128], index: 1, kind: input, shape index: {}]   ;;  %s319_s2 = inlined_call_operand.vmem [shape: f32[1,128], index: 2, kind: input, shape index: {}]   ;;  %s320_s3 = inlined_call_operand.hbm [shape: f32[8,128], index: 3, kind: output, shape index: {}]  }
   0x1   :  { %9 = vsyncpa [#allocation6], 0 }
   0x2   :  { %10 = vsyncpa [#allocation4], 0  ;;  %s278_s12 = smov [#allocation2]   ;;  %s279_s14 = smov [#allocation5]  }
   0x3   :  { %s17_s13 = sshll.u32 %s278_s12, 4  ;;  %s26_s15 = sshll.u32 %s279_s14, 4  ;;  %s18_s13 = int_to_ptr.vmem [resolvable:$true] %s17_s13  ;;  %s27_s15 = int_to_ptr.vmem [resolvable:$true] %s26_s15 }
   0x4   :  { %s220_s16 = scalar_lea.vmem %s18_s13, 128  ;;  %p225_p1 = scmp.lt.s32.totalorder %s18_s13, %s18_s13 }
   0x5   :  { %p221_p0 = scmp.ne.s32.totalorder %s18_s13, %s220_s16  ;;  %p226_p2 = scmp.lt.s32.totalorder %s220_s16, %s220_s16 }
   0x7   :  { %p227_p3 = por %p226_p2, %p225_p1 }
   0x9   :  { %p228_p4 = pnand %p227_p3, %p221_p0 }
   0xb   :  { %231 = shalt.err (!%p228_p4)
}
   0xc   :  { %20 = dma.hbm_to_vmem [thread:$0]  %s317_s0, 128, %s18_s13, [#allocation3]  }
   0xd   :  { %s240_s19 = scalar_lea.vmem %s27_s15, 2048  ;;  %p245_p6 = scmp.lt.s32.totalorder %s27_s15, %s27_s15 }
   0xe   :  { %p241_p5 = scmp.ne.s32.totalorder %s27_s15, %s240_s19  ;;  %p246_p7 = scmp.lt.s32.totalorder %s240_s19, %s240_s19 }
  0x10   :  { %p247_p8 = por %p246_p7, %p245_p6 }
  0x12   :  { %p248_p9 = pnand %p247_p8, %p241_p5 }
  0x14   :  { %251 = shalt.err (!%p248_p9)
}
  0x15   :  { %s280_s20 = smov 128   ;;  %s281_s21 = smov 8  }
  0x16   :  { %32 = dma.hbm_to_vmem [thread:$0]  %s318_s1, 2048, %s27_s15, [#allocation6], %s280_s20, %s280_s20, %s281_s21  }
  0x17   :  { %272 = dma.done.wait [#allocation3], 128  }
  0x18   :  { %273 = vsyncadd [#allocation3], 4294967168 }
  0x19   :  { %274 = dma.done.wait [#allocation6], 2048  }
  0x1a   :  { %275 = vsyncadd [#allocation6], 4294965248  ;;  %v282_v0 = vmov 0.0   ;;  %vm283_vm0 = vmmov 0   ;;  %v57_v1 = vld [vmem:[#allocation5 + $0x78] sm:$0xff]  ;;  %v56_v2 = vld [vmem:[#allocation5 + $0x70] sm:$0xff] }
  0x1b   :  { %170 = vmatprep.subr.mxu0 %v282_v0  ;;  %202 = vmatprep.mubr.msk.f32.mxu0 %vm283_vm0, %v282_v0  ;;  %v55_v3 = vld [vmem:[#allocation5 + $0x68] sm:$0xff]  ;;  %v54_v4 = vld [vmem:[#allocation5 + $0x60] sm:$0xff]  ;;  %v53_v5 = vld [vmem:[#allocation5 + $0x58] sm:$0xff]  ;;  %s284_s24 = smov [#allocation7]  }
  0x1c   :  { %171 = vmatpush3.xpose.msra.mxu0 %v57_v1  ;;  %v52_v6 = vld [vmem:[#allocation5 + $0x50] sm:$0xff]  ;;  %v51_v7 = vld [vmem:[#allocation5 + $0x48] sm:$0xff]  ;;  %v50_v8 = vld [vmem:[#allocation5 + $0x40] sm:$0xff]  ;;  %s142_s25 = sshll.u32 %s284_s24, 4  ;;  %s143_s25 = int_to_ptr.vmem [resolvable:$true] %s142_s25 }
  0x1d   :  { %172 = vmatprep.subr.mxu0 %v282_v0  ;;  %v49_v9 = vld [vmem:[#allocation5 + $0x38] sm:$0xff]  ;;  %v48_v10 = vld [vmem:[#allocation5 + $0x30] sm:$0xff]  ;;  %v47_v11 = vld [vmem:[#allocation5 + $0x28] sm:$0xff]  ;;  %s252_s26 = scalar_lea.vmem %s143_s25, 128  ;;  %p257_p11 = scmp.lt.s32.totalorder %s143_s25, %s143_s25 }
  0x1e   :  { %v46_v12 = vld [vmem:[#allocation5 + $0x20] sm:$0xff]  ;;  %v45_v13 = vld [vmem:[#allocation5 + $0x18] sm:$0xff]  ;;  %v44_v14 = vld [vmem:[#allocation5 + $0x10] sm:$0xff]  ;;  %p253_p10 = scmp.ne.s32.totalorder %s143_s25, %s252_s26  ;;  %p258_p12 = scmp.lt.s32.totalorder %s252_s26, %s252_s26 }
  0x1f   :  { %v43_v15 = vld [vmem:[#allocation5 + $0x8] sm:$0xff]  ;;  %v42_v16 = vld [vmem:[#allocation5] sm:$0xff]  ;;  %v41_v17 = vld [vmem:[#allocation2] sm:$0xff] }
  0x20   :  { %173 = vmatpush3.xpose.msra.mxu0 %v56_v2  ;;  %v152_v18 = vld [vmem:[%s319_s2] ss:$0 sm:$0xff]  ;;  %p259_p13 = por %p258_p12, %p257_p11 }
  0x21   :  { %174 = vmatprep.subr.mxu0 %v282_v0 }
  0x22   :  { %p260_p0 = pnand %p259_p13, %p253_p10 }
  0x24   :  { %175 = vmatpush3.xpose.msra.mxu0 %v55_v3 }
  0x25   :  { %176 = vmatprep.subr.mxu0 %v282_v0 }
  0x28   :  { %177 = vmatpush3.xpose.msra.mxu0 %v54_v4 }
  0x29   :  { %178 = vmatprep.subr.mxu0 %v282_v0 }
  0x2c   :  { %179 = vmatpush3.xpose.msra.mxu0 %v53_v5 }
  0x2d   :  { %180 = vmatprep.subr.mxu0 %v282_v0 }
  0x30   :  { %181 = vmatpush3.xpose.msra.mxu0 %v52_v6 }
  0x31   :  { %182 = vmatprep.subr.mxu0 %v282_v0 }
  0x34   :  { %183 = vmatpush3.xpose.msra.mxu0 %v51_v7 }
  0x35   :  { %184 = vmatprep.subr.mxu0 %v282_v0 }
  0x38   :  { %185 = vmatpush3.xpose.msra.mxu0 %v50_v8 }
  0x39   :  { %186 = vmatprep.subr.mxu0 %v282_v0 }
  0x3c   :  { %187 = vmatpush3.xpose.msra.mxu0 %v49_v9 }
  0x3d   :  { %188 = vmatprep.subr.mxu0 %v282_v0 }
  0x40   :  { %189 = vmatpush3.xpose.msra.mxu0 %v48_v10 }
  0x41   :  { %190 = vmatprep.subr.mxu0 %v282_v0 }
  0x44   :  { %191 = vmatpush3.xpose.msra.mxu0 %v47_v11 }
  0x45   :  { %192 = vmatprep.subr.mxu0 %v282_v0 }
  0x48   :  { %193 = vmatpush3.xpose.msra.mxu0 %v46_v12 }
  0x49   :  { %194 = vmatprep.subr.mxu0 %v282_v0 }
  0x4c   :  { %195 = vmatpush3.xpose.msra.mxu0 %v45_v13 }
  0x4d   :  { %196 = vmatprep.subr.mxu0 %v282_v0 }
  0x50   :  { %197 = vmatpush3.xpose.msra.mxu0 %v44_v14 }
  0x51   :  { %198 = vmatprep.subr.mxu0 %v282_v0 }
  0x54   :  { %199 = vmatpush3.xpose.msra.mxu0 %v43_v15 }
  0x55   :  { %200 = vmatprep.subr.mxu0 %v282_v0 }
  0x58   :  { %201 = vmatpush3.xpose.msra.mxu0 %v42_v16 }
  0x5b   :  { %203 = vmatmul.mubr.f32.vlgmr.msra.gmra.mxu0 %v41_v17 }
 0x11b   :  { %v131_v19 = vpop.f32.mrf.mxu0 }
 0x11c   :  { %v132_v20 = vadd.f32 %v152_v18, %v131_v19 }
 0x11d   :  { %v204_v21 = vpop.f32.mrf.mxu0 }
 0x11e   :  { %135 = vst [vmem:[#allocation7] sm:$0xff] %v132_v20 }
 0x11f   :  { %263 = shalt.err (!%p260_p0)
}
 0x120   :  { %145 = dma.vmem_to_hbm [thread:$0]  %s143_s25, 128, %s320_s3, [#allocation4]  }
 0x121   :  { %276 = dma.done.wait [#allocation4], 128  }
 0x122   :  { %277 = vsyncadd [#allocation4], 4294967168 }
 0x123   :  { %149 = vsyncpa [#allocation3], 1 }
 0x124   :  { %150 = vsyncpa [#allocation6], 1 }
 0x125   :  { %151 = vsyncpa [#allocation4], 1 }

</bundles_post_ra>
